<compile_context>
chip_gen: v7x
topology: tpu7x:2x2x1
jax: 0.10.0
libtpu: 0.0.40
codegen_flags: <defaults>
</compile_context>

<pallas_src>
import functools

import numpy as np
import jax
import jax.numpy as jnp
from jax.experimental import pallas as pl
from jax.experimental.pallas import tpu as pltpu


def build_shuffle(img_size, patch, stride):
    """Identical index list to the PyTorch module's __init__."""
    loop = img_size // patch // stride
    shuffle = []
    for i in range(stride):
        for j in range(loop):
            shuffle += list(range(i * patch + j * patch * stride,
                                  i * patch + patch + j * patch * stride))
    return shuffle


def build_perm_factors(img_size, shuffle, dtype=np.float32):
    """One-hot factor A (img_size, L), A[h, i] = 1 iff h == shuffle[i], and A^T.

    (v @ A)[j] = v[shuffle[j]]  and  (A^T @ M)[i, :] = M[shuffle[i], :],
    so Y = A^T @ X @ A applies the permutation to both spatial axes.
    """
    L = len(shuffle)
    a = np.zeros((img_size, L), dtype)
    a[np.asarray(shuffle), np.arange(L)] = 1.0
    return a, np.ascontiguousarray(a.T)


def _reshuffle_kernel(x_ref, a_ref, at_ref, o_ref):
    # x_ref: (tm, H, W);  a_ref: (W, L);  at_ref: (L, H);  o_ref: (tm, L, L)
    tm = x_ref.shape[0]
    x = x_ref[...].astype(jnp.float32)
    # Broadcast the tiny one-hot factors across the batch so both contractions
    # are canonical batched matmuls (same pattern as the flash-attn einsums).
    a_b = jnp.broadcast_to(a_ref[...].astype(jnp.float32), (tm,) + a_ref.shape)
    at_b = jnp.broadcast_to(at_ref[...].astype(jnp.float32), (tm,) + at_ref.shape)
    # Column permutation: t[b, h, j] = x[b, h, shuffle[j]]
    t = jnp.einsum('bhw,bwj->bhj', x, a_b, preferred_element_type=jnp.float32)
    # Row permutation:    y[b, i, j] = t[b, shuffle[i], j] = x[b, shuffle[i], shuffle[j]]
    y = jnp.einsum('bih,bhj->bij', at_b, t, preferred_element_type=jnp.float32)
    o_ref[...] = y.astype(o_ref.dtype)


@functools.partial(jax.jit, static_argnames=("row_tile",))
def reshuffle_pallas(x, a, at, *, row_tile=256):
    """x: (B, C, H, W); a: (H, L) one-hot; at: (L, H) = a.T.  Returns (B, C, L, L)."""
    B, C, H, W = x.shape
    L = a.shape[1]
    BC = B * C
    x3 = x.reshape(BC, H, W)                      # free (contiguous) reshape

    itemsize = jnp.dtype(x.dtype).itemsize
    cost = pl.CostEstimate(
        flops=2 * BC * (H * W * L + H * L * L),
        transcendentals=0,
        bytes_accessed=itemsize * (BC * H * W + BC * L * L) + 2 * 4 * H * L)

    if BC <= row_tile:
        # Whole problem resident in VMEM; no grid => no pipelining machinery,
        # no double-buffering, no per-step overhead.
        y3 = pl.pallas_call(
            _reshuffle_kernel,
            out_shape=jax.ShapeDtypeStruct((BC, L, L), x.dtype),
            in_specs=[pl.BlockSpec(memory_space=pltpu.VMEM),
                      pl.BlockSpec(memory_space=pltpu.VMEM),
                      pl.BlockSpec(memory_space=pltpu.VMEM)],
            out_specs=pl.BlockSpec(memory_space=pltpu.VMEM),
            cost_estimate=cost,
        )(x3, a, at)
    else:
        # Batch-tiled "parallel" path (megacore split on v7x, correct scaling
        # path on v5e/v6e).  A / A^T index maps return (0, 0) so the factors
        # stay VMEM-resident across the whole grid.
        grid = (pl.cdiv(BC, row_tile),)
        y3 = pl.pallas_call(
            _reshuffle_kernel,
            out_shape=jax.ShapeDtypeStruct((BC, L, L), x.dtype),
            grid=grid,
            in_specs=[pl.BlockSpec((row_tile, H, W), lambda m: (m, 0, 0)),
                      pl.BlockSpec((H, L), lambda m: (0, 0)),
                      pl.BlockSpec((L, H), lambda m: (0, 0))],
            out_specs=pl.BlockSpec((row_tile, L, L), lambda m: (m, 0, 0)),
            compiler_params=pltpu.CompilerParams(
                dimension_semantics=("parallel",)),
            cost_estimate=cost,
        )(x3, a, at)
    return y3.reshape(B, C, L, L)


if __name__ == "__main__":
    key = jax.random.PRNGKey(0)
    # (B, C, img_size, patch, stride, row_tile)
    configs = [
        (2, 4, 16, 2, 2, 256),   # primary config -> no-grid whole-VMEM path
        (2, 4, 8, 2, 2, 256),    # module default img_size=8
        (4, 16, 16, 2, 2, 16),   # forces the batch-tiled "parallel" grid path
    ]

    for B, C, img_size, patch, stride, row_tile in configs:
        key, kx = jax.random.split(key)
        x = jax.random.normal(kx, (B, C, img_size, img_size), jnp.float32)

        shuffle = build_shuffle(img_size, patch, stride)
        a_np, at_np = build_perm_factors(img_size, shuffle)
        a, at = jnp.asarray(a_np), jnp.asarray(at_np)

        y = jax.block_until_ready(reshuffle_pallas(x, a, at, row_tile=row_tile))

        # pure-JAX reference: advanced-index gather, matching the torch forward
        sh = jnp.asarray(shuffle, jnp.int32)
        y_ref = x[:, :, sh, :][:, :, :, sh]
        assert y.shape == y_ref.shape, (y.shape, y_ref.shape)
        max_err = float(jnp.max(jnp.abs(y - y_ref)))
        assert max_err <= 1e-6, \
            f"img_size={img_size} row_tile={row_tile}: max abs err {max_err}"

    print("KERNEL_OK")
</pallas_src>

<mosaic_0001>
module attributes {stable_mosaic.version = 11 : i64} {
  func.func @_reshuffle_kernel(%arg0: memref<8x16x16xf32, #tpu.memory_space<vmem>>, %arg1: memref<16x16xf32, #tpu.memory_space<vmem>>, %arg2: memref<16x16xf32, #tpu.memory_space<vmem>>, %arg3: memref<8x16x16xf32, #tpu.memory_space<vmem>>) attributes {dimension_semantics = [], scalar_prefetch = 0 : i64, scratch_operands = 0 : i64, tpu.core_type = #tpu.core_type<tc>} {
    %c0 = arith.constant 0 : index
    %c0_0 = arith.constant 0 : index
    %c0_1 = arith.constant 0 : index
    %0 = vector.load %arg0[%c0, %c0_0, %c0_1] : memref<8x16x16xf32, #tpu.memory_space<vmem>>, vector<8x16x16xf32>
    %c0_2 = arith.constant 0 : index
    %c0_3 = arith.constant 0 : index
    %1 = vector.load %arg1[%c0_2, %c0_3] : memref<16x16xf32, #tpu.memory_space<vmem>>, vector<16x16xf32>
    %2 = vector.shape_cast %1 : vector<16x16xf32> to vector<1x16x16xf32>
    %3 = vector.broadcast %2 : vector<1x16x16xf32> to vector<8x16x16xf32>
    %c0_4 = arith.constant 0 : index
    %c0_5 = arith.constant 0 : index
    %4 = vector.load %arg2[%c0_4, %c0_5] : memref<16x16xf32, #tpu.memory_space<vmem>>, vector<16x16xf32>
    %5 = vector.shape_cast %4 : vector<16x16xf32> to vector<1x16x16xf32>
    %6 = vector.broadcast %5 : vector<1x16x16xf32> to vector<8x16x16xf32>
    "tpu.trace_start"() <{level = 10 : i32, message = "bhw,bwj->bhj"}> : () -> ()
    %cst = arith.constant dense<0.000000e+00> : vector<8x16x16xf32>
    %7 = tpu.matmul %0, %3, %cst {dimension_numbers = #tpu.dot_dimension_numbers<[2], [1], [1], [2], [0, 0, 0, 1, 1, 2], [0], [0]>} : vector<8x16x16xf32>, vector<8x16x16xf32>, vector<8x16x16xf32> -> vector<8x16x16xf32>
    "tpu.trace_stop"() : () -> ()
    "tpu.trace_start"() <{level = 10 : i32, message = "bih,bhj->bij"}> : () -> ()
    %cst_6 = arith.constant dense<0.000000e+00> : vector<8x16x16xf32>
    %8 = tpu.matmul %6, %7, %cst_6 {dimension_numbers = #tpu.dot_dimension_numbers<[2], [1], [1], [2], [0, 0, 0, 1, 1, 2], [0], [0]>} : vector<8x16x16xf32>, vector<8x16x16xf32>, vector<8x16x16xf32> -> vector<8x16x16xf32>
    "tpu.trace_stop"() : () -> ()
    %c0_7 = arith.constant 0 : index
    %c0_8 = arith.constant 0 : index
    %c0_9 = arith.constant 0 : index
    %9 = vector.load %arg3[%c0_7, %c0_8, %c0_9] : memref<8x16x16xf32, #tpu.memory_space<vmem>>, vector<8x16x16xf32>
    tpu.vector_store %arg3[%c0_7, %c0_8, %c0_9], %8 {strides = array<i32>} : memref<8x16x16xf32, #tpu.memory_space<vmem>>, vector<8x16x16xf32>,
    return
  }
}

</mosaic_0001>

<bundles_post_ra>
// kernel: reshuffle_pallas.1
= control target key start
LH: loop header
LB: loop body
LE: loop exit
PB: predicated region body
PF: predicated region fallthrough
CT: control target
= control target key end

     0   :  { %8 = vsyncpa [#allocation3], 0  ;;  %s1878_s0 = inlined_call_operand.hbm [shape: f32[8,16,16], index: 0, kind: input, shape index: {}]   ;;  %s1879_s1 = inlined_call_operand.hbm [shape: f32[16,16], index: 1, kind: input, shape index: {}]   ;;  %s1880_s2 = inlined_call_operand.hbm [shape: f32[16,16], index: 2, kind: input, shape index: {}]   ;;  %s1881_s3 = inlined_call_operand.hbm [shape: f32[8,16,16], index: 3, kind: output, shape index: {}]  }
   0x1   :  { %9 = vsyncpa [#allocation6], 0 }
   0x2   :  { %10 = vsyncpa [#allocation4], 0  ;;  %s1737_s12 = smov [#allocation5]   ;;  %s1738_s14 = smov [#allocation2]  }
   0x3   :  { %s28_s13 = sshll.u32 %s1737_s12, 4  ;;  %s16_s15 = sshll.u32 %s1738_s14, 4  ;;  %s29_s13 = int_to_ptr.vmem [resolvable:$true] %s28_s13  ;;  %s1763_s15 = int_to_ptr.vmem [resolvable:$true] %s16_s15 }
   0x4   :  { %s1643_s18 = scalar_lea.hbm %s1879_s1, 256 }
   0x5   :  { %p1644_p0 = scmp.ne.s32.totalorder %s1879_s1, %s1643_s18  ;;  %p1647_p1 = scmp.lt.u32.totalorder %s1643_s18, %s1879_s1 }
   0x7   :  { %p1649_p2 = pnand %p1647_p1, %p1644_p0 }
   0x9   :  { %1652 = shalt.err (!%p1649_p2)
}
   0xa   :  { %s1653_s23 = scalar_lea.vmem %s29_s13, 256  ;;  %p1658_p4 = scmp.lt.s32.totalorder %s29_s13, %s29_s13 }
   0xb   :  { %p1654_p3 = scmp.ne.s32.totalorder %s29_s13, %s1653_s23  ;;  %p1659_p5 = scmp.lt.s32.totalorder %s1653_s23, %s1653_s23 }
   0xd   :  { %p1660_p6 = por %p1659_p5, %p1658_p4 }
   0xf   :  { %p1661_p7 = pnand %p1660_p6, %p1654_p3 }
  0x11   :  { %1664 = shalt.err (!%p1661_p7)
}
  0x12   :  { %s1739_s24 = smov 128   ;;  %s1740_s25 = smov 8  }
  0x13   :  { %34 = dma.hbm_to_vmem [thread:$0]  %s1879_s1, 256, %s29_s13, [#allocation6], %s1739_s24, %s1739_s24, %s1740_s25  }
  0x14   :  { %s1665_s30 = scalar_lea.hbm %s1878_s0, 2048 }
  0x15   :  { %p1666_p8 = scmp.ne.s32.totalorder %s1878_s0, %s1665_s30  ;;  %p1669_p9 = scmp.lt.u32.totalorder %s1665_s30, %s1878_s0 }
  0x17   :  { %p1671_p10 = pnand %p1669_p9, %p1666_p8 }
  0x19   :  { %1674 = shalt.err (!%p1671_p10)
}
  0x1a   :  { %s1675_s8 = scalar_lea.vmem %s1763_s15, 2048  ;;  %p1680_p12 = scmp.lt.s32.totalorder %s1763_s15, %s1763_s15 }
  0x1b   :  { %p1676_p11 = scmp.ne.s32.totalorder %s1763_s15, %s1675_s8  ;;  %p1681_p13 = scmp.lt.s32.totalorder %s1675_s8, %s1675_s8 }
  0x1d   :  { %p1682_p0 = por %p1681_p13, %p1680_p12 }
  0x1f   :  { %p1683_p1 = pnand %p1682_p0, %p1676_p11 }
  0x21   :  { %1686 = shalt.err (!%p1683_p1)
}
  0x22   :  { %22 = dma.hbm_to_vmem [thread:$0]  %s1878_s0, 2048, %s1763_s15, [#allocation3], %s1739_s24, %s1739_s24, %s1740_s25  }
  0x23   :  { %s1741_s10 = smov [#allocation7]   ;;  %s1687_s14 = scalar_lea.hbm %s1880_s2, 256 }
  0x24   :  { %s40_s11 = sshll.u32 %s1741_s10, 4  ;;  %p1688_p2 = scmp.ne.s32.totalorder %s1880_s2, %s1687_s14  ;;  %s41_s11 = int_to_ptr.vmem [resolvable:$true] %s40_s11 }
  0x25   :  { %p1691_p3 = scmp.lt.u32.totalorder %s1687_s14, %s1880_s2 }
  0x27   :  { %p1693_p4 = pnand %p1691_p3, %p1688_p2 }
  0x29   :  { %1696 = shalt.err (!%p1693_p4)
}
  0x2a   :  { %s1697_s20 = scalar_lea.vmem %s41_s11, 256  ;;  %p1702_p6 = scmp.lt.s32.totalorder %s41_s11, %s41_s11 }
  0x2b   :  { %p1698_p5 = scmp.ne.s32.totalorder %s41_s11, %s1697_s20  ;;  %p1703_p7 = scmp.lt.s32.totalorder %s1697_s20, %s1697_s20 }
  0x2d   :  { %p1704_p8 = por %p1703_p7, %p1702_p6 }
  0x2f   :  { %p1705_p9 = pnand %p1704_p8, %p1698_p5 }
  0x31   :  { %1708 = shalt.err (!%p1705_p9)
}
  0x32   :  { %46 = dma.hbm_to_vmem [thread:$0]  %s1880_s2, 256, %s41_s11, [#allocation6], %s1739_s24, %s1739_s24, %s1740_s25  }
  0x33   :  { %1731 = dma.done.wait [#allocation3], 2048  }
  0x34   :  { %1732 = vsyncadd [#allocation3], 4294965248 }
  0x35   :  { %1733 = dma.done.wait [#allocation6], 512  }
  0x36   :  { %1734 = vsyncadd [#allocation6], 4294966784  ;;  %vm76_vm0 = vcmask 130048   ;;  %v72_v0 = vld [vmem:[#allocation5] sm:$0xff]  ;;  %v73_v1 = vld [vmem:[#allocation5 + $0x8] sm:$0xff]  ;;  %s1742_s2 = smov [#allocation8]  }
  0x37   :  { %v56_v2 = vld [vmem:[#allocation2] sm:$0xff]  ;;  %v1573_v3 = vpack.c.bf16 %v73_v1, %v72_v0  ;;  %v58_v4 = vld [vmem:[#allocation2 + $0x10] sm:$0xff]  ;;  %v57_v5 = vld [vmem:[#allocation2 + $0x8] sm:$0xff]  ;;  %s1352_s21 = sshll.u32 %s1742_s2, 4  ;;  %s1353_s21 = int_to_ptr.vmem [resolvable:$true] %s1352_s21 }
  0x38   :  { %1465 = vmatprep.mubr.msk.f32.mxu0 %vm76_vm0, %v56_v2  ;;  %1472 = vmatprep.mubr.msk.f32.mxu1 %vm76_vm0, %v58_v4  ;;  %v59_v6 = vld [vmem:[#allocation2 + $0x18] sm:$0xff]  ;;  %v60_v7 = vld [vmem:[#allocation2 + $0x20] sm:$0xff]  ;;  %v62_v8 = vld [vmem:[#allocation2 + $0x30] sm:$0xff]  ;;  %s1709_s22 = scalar_lea.vmem %s1353_s21, 2048  ;;  %p1714_p11 = scmp.lt.s32.totalorder %s1353_s21, %s1353_s21 }
  0x39   :  { %1574 = vmatprep.subr.bf16.mxu0 %v1573_v3  ;;  %1578 = vmatprep.subr.bf16.mxu1 %v1573_v3  ;;  %v61_v9 = vld [vmem:[#allocation2 + $0x28] sm:$0xff]  ;;  %v63_v10 = vld [vmem:[#allocation2 + $0x38] sm:$0xff]  ;;  %v64_v11 = vld [vmem:[#allocation2 + $0x40] sm:$0xff]  ;;  %p1710_p10 = scmp.ne.s32.totalorder %s1353_s21, %s1709_s22  ;;  %p1715_p12 = scmp.lt.s32.totalorder %s1709_s22, %s1709_s22 }
  0x3a   :  { %1576 = vmatpush3.bf16.msra.mxu0 %v1573_v3  ;;  %1580 = vmatpush3.bf16.msra.mxu1 %v1573_v3  ;;  %v66_v12 = vld [vmem:[#allocation2 + $0x50] sm:$0xff]  ;;  %v65_v13 = vld [vmem:[#allocation2 + $0x48] sm:$0xff]  ;;  %v67_v14 = vld [vmem:[#allocation2 + $0x58] sm:$0xff] }
  0x3b   :  { %1582 = vmatprep.subr.bf16.mxu0 %v1573_v3  ;;  %1586 = vmatprep.subr.bf16.mxu1 %v1573_v3  ;;  %v68_v15 = vld [vmem:[#allocation2 + $0x60] sm:$0xff]  ;;  %v70_v16 = vld [vmem:[#allocation2 + $0x70] sm:$0xff]  ;;  %v69_v17 = vld [vmem:[#allocation2 + $0x68] sm:$0xff]  ;;  %p1716_p13 = por %p1715_p12, %p1714_p11 }
  0x3c   :  { %v71_v18 = vld [vmem:[#allocation2 + $0x78] sm:$0xff]  ;;  %v74_v19 = vld [vmem:[#allocation7] sm:$0xff] }
  0x3d   :  { %1466 = vmatmul.mubr.msk.f32.vlgmr.msra.gmra.mrb[0].mxu0 %vm76_vm0, %v57_v5  ;;  %1473 = vmatmul.mubr.msk.f32.vlgmr.msra.gmra.mrb[0].mxu1 %vm76_vm0, %v59_v6  ;;  %v75_v30 = vld [vmem:[#allocation7 + $0x8] sm:$0xff]  ;;  %p1717_p0 = pnand %p1716_p13, %p1710_p10 }
  0x3e   :  { %1584 = vmatpush3.bf16.msra.mxu0 %v1573_v3  ;;  %1588 = vmatpush3.bf16.msra.mxu1 %v1573_v3 }
  0x3f   :  { %1479 = vmatprep.mubr.msk.f32.mxu0 %vm76_vm0, %v60_v7  ;;  %1486 = vmatprep.mubr.msk.f32.mxu1 %vm76_vm0, %v62_v8 }
  0x40   :  { %1590 = vmatprep.subr.bf16.mxu0 %v1573_v3  ;;  %1594 = vmatprep.subr.bf16.mxu1 %v1573_v3 }
  0x41   :  { %1480 = vmatmul.mubr.msk.f32.vlgmr.msra.gmra.mrb[2].mxu0 %vm76_vm0, %v61_v9  ;;  %1487 = vmatmul.mubr.msk.f32.vlgmr.msra.gmra.mrb[2].mxu1 %vm76_vm0, %v63_v10 }
  0x42   :  { %1592 = vmatpush3.bf16.msra.mxu0 %v1573_v3  ;;  %1596 = vmatpush3.bf16.msra.mxu1 %v1573_v3 }
  0x43   :  { %1493 = vmatprep.mubr.msk.f32.mxu0 %vm76_vm0, %v64_v11  ;;  %1500 = vmatprep.mubr.msk.f32.mxu1 %vm76_vm0, %v66_v12 }
  0x44   :  { %1598 = vmatprep.subr.bf16.mxu0 %v1573_v3  ;;  %1602 = vmatprep.subr.bf16.mxu1 %v1573_v3 }
  0x45   :  { %1494 = vmatmul.mubr.msk.f32.vlgmr.msra.gmra.mrb[4].mxu0 %vm76_vm0, %v65_v13  ;;  %1501 = vmatmul.mubr.msk.f32.vlgmr.msra.gmra.mrb[4].mxu1 %vm76_vm0, %v67_v14 }
  0x46   :  { %1600 = vmatpush3.bf16.msra.mxu0 %v1573_v3  ;;  %1604 = vmatpush3.bf16.msra.mxu1 %v1573_v3 }
  0x47   :  { %1507 = vmatprep.mubr.msk.f32.mxu0 %vm76_vm0, %v68_v15  ;;  %1514 = vmatprep.mubr.msk.f32.mxu1 %vm76_vm0, %v70_v16 }
  0x49   :  { %1508 = vmatmul.mubr.msk.f32.vlgmr.msra.gmra.mrb[6].mxu0 %vm76_vm0, %v69_v17  ;;  %1515 = vmatmul.mubr.msk.f32.vlgmr.msra.gmra.mrb[6].mxu1 %vm76_vm0, %v71_v18 }
  0x4a   :  { %1521 = vmatprep.mubr.msk.f32.mxu0 %vm76_vm0, %v74_v19  ;;  %1528 = vmatprep.mubr.msk.f32.mxu1 %vm76_vm0, %v74_v19 }
 0x110   :  { %v1467_v20 = vpop.f32.mrb[0].mxu0  ;;  %v1474_v21 = vpop.f32.mrb[0].mxu1 }
 0x111   :  { %v149_v22 = vpop.f32.mrb[1].mxu0  ;;  %v230_v23 = vpop.f32.mrb[1].mxu1 }
 0x112   :  { %v1605_v24 = vpack.c.bf16 %v1467_v20, %v149_v22  ;;  %v1609_v25 = vpack.c.bf16 %v1474_v21, %v230_v23 }
 0x114   :  { %v1481_v26 = vpop.f32.mrb[2].mxu0  ;;  %v1488_v27 = vpop.f32.mrb[2].mxu1  ;;  %1606 = vmatprep.subr.bf16.mxu0 %v1605_v24  ;;  %1610 = vmatprep.subr.bf16.mxu1 %v1609_v25 }
 0x115   :  { %v311_v28 = vpop.f32.mrb[3].mxu0  ;;  %v392_v29 = vpop.f32.mrb[3].mxu1  ;;  %1608 = vmatpush3.bf16.msra.mxu0 %v1605_v24  ;;  %1612 = vmatpush3.bf16.msra.mxu1 %v1609_v25 }
 0x116   :  { %v1613_v31 = vpack.c.bf16 %v1481_v26, %v311_v28  ;;  %v1617_v32 = vpack.c.bf16 %v1488_v27, %v392_v29 }
 0x118   :  { %v1495_v33 = vpop.f32.mrb[4].mxu0  ;;  %v1502_v34 = vpop.f32.mrb[4].mxu1  ;;  %1522 = vmatmul.mubr.msk.f32.vlgmr.msra.gmra.mrb[8].mxu0 %vm76_vm0, %v75_v30  ;;  %1529 = vmatmul.mubr.msk.f32.vlgmr.msra.gmra.mrb[8].mxu1 %vm76_vm0, %v75_v30 }
 0x119   :  { %1614 = vmatprep.subr.bf16.mxu0 %v1613_v31  ;;  %1618 = vmatprep.subr.bf16.mxu1 %v1617_v32  ;;  %v473_v35 = vpop.f32.mrb[5].mxu0  ;;  %v554_v36 = vpop.f32.mrb[5].mxu1 }
 0x11a   :  { %v1621_v37 = vpack.c.bf16 %v1495_v33, %v473_v35  ;;  %v1625_v38 = vpack.c.bf16 %v1502_v34, %v554_v36  ;;  %1616 = vmatpush3.bf16.msra.mxu0 %v1613_v31  ;;  %1620 = vmatpush3.bf16.msra.mxu1 %v1617_v32 }
 0x11b   :  { %1535 = vmatprep.mubr.msk.f32.mxu0 %vm76_vm0, %v74_v19  ;;  %1542 = vmatprep.mubr.msk.f32.mxu1 %vm76_vm0, %v74_v19 }
 0x11c   :  { %v1509_v39 = vpop.f32.mrb[6].mxu0  ;;  %v1516_v40 = vpop.f32.mrb[6].mxu1  ;;  %1622 = vmatprep.subr.bf16.mxu0 %v1621_v37  ;;  %1626 = vmatprep.subr.bf16.mxu1 %v1625_v38 }
 0x11d   :  { %1536 = vmatmul.mubr.msk.f32.vlgmr.msra.gmra.mrb[10].mxu0 %vm76_vm0, %v75_v30  ;;  %1543 = vmatmul.mubr.msk.f32.vlgmr.msra.gmra.mrb[10].mxu1 %vm76_vm0, %v75_v30  ;;  %v635_v41 = vpop.f32.mrb[7].mxu0  ;;  %v716_v42 = vpop.f32.mrb[7].mxu1 }
 0x11e   :  { %v1629_v43 = vpack.c.bf16 %v1509_v39, %v635_v41  ;;  %v1633_v44 = vpack.c.bf16 %v1516_v40, %v716_v42  ;;  %1624 = vmatpush3.bf16.msra.mxu0 %v1621_v37  ;;  %1628 = vmatpush3.bf16.msra.mxu1 %v1625_v38 }
 0x11f   :  { %1549 = vmatprep.mubr.msk.f32.mxu0 %vm76_vm0, %v74_v19  ;;  %1556 = vmatprep.mubr.msk.f32.mxu1 %vm76_vm0, %v74_v19 }
 0x120   :  { %1630 = vmatprep.subr.bf16.mxu0 %v1629_v43  ;;  %1634 = vmatprep.subr.bf16.mxu1 %v1633_v44 }
 0x121   :  { %1550 = vmatmul.mubr.msk.f32.vlgmr.msra.gmra.mrb[12].mxu0 %vm76_vm0, %v75_v30  ;;  %1557 = vmatmul.mubr.msk.f32.vlgmr.msra.gmra.mrb[12].mxu1 %vm76_vm0, %v75_v30 }
 0x122   :  { %1632 = vmatpush3.bf16.msra.mxu0 %v1629_v43  ;;  %1636 = vmatpush3.bf16.msra.mxu1 %v1633_v44 }
 0x123   :  { %1563 = vmatprep.mubr.msk.f32.mxu0 %vm76_vm0, %v74_v19  ;;  %1570 = vmatprep.mubr.msk.f32.mxu1 %vm76_vm0, %v74_v19 }
 0x125   :  { %1564 = vmatmul.mubr.msk.f32.vlgmr.msra.gmra.mrb[14].mxu0 %vm76_vm0, %v75_v30  ;;  %1571 = vmatmul.mubr.msk.f32.vlgmr.msra.gmra.mrb[14].mxu1 %vm76_vm0, %v75_v30 }
 0x1eb   :  { %v1523_v45 = vpop.f32.mrb[8].mxu0  ;;  %v1530_v46 = vpop.f32.mrb[8].mxu1 }
 0x1ec   :  { %1332 = vst.msk [vmem:[#allocation8 + $0x8] sm:$0xff] %vm76_vm0, %v1523_v45  ;;  %1334 = vst.msk [vmem:[#allocation8 + $0x18] sm:$0xff] %vm76_vm0, %v1530_v46  ;;  %v797_v47 = vpop.f32.mrb[9].mxu0  ;;  %v872_v48 = vpop.f32.mrb[9].mxu1 }
 0x1ed   :  { %1331 = vst.msk [vmem:[#allocation8] sm:$0xff] %vm76_vm0, %v797_v47  ;;  %1333 = vst.msk [vmem:[#allocation8 + $0x10] sm:$0xff] %vm76_vm0, %v872_v48 }
 0x1f0   :  { %v1537_v49 = vpop.f32.mrb[10].mxu0  ;;  %v1544_v50 = vpop.f32.mrb[10].mxu1 }
 0x1f1   :  { %1336 = vst.msk [vmem:[#allocation8 + $0x28] sm:$0xff] %vm76_vm0, %v1537_v49  ;;  %1338 = vst.msk [vmem:[#allocation8 + $0x38] sm:$0xff] %vm76_vm0, %v1544_v50  ;;  %v947_v51 = vpop.f32.mrb[11].mxu0  ;;  %v1022_v52 = vpop.f32.mrb[11].mxu1 }
 0x1f2   :  { %1335 = vst.msk [vmem:[#allocation8 + $0x20] sm:$0xff] %vm76_vm0, %v947_v51  ;;  %1337 = vst.msk [vmem:[#allocation8 + $0x30] sm:$0xff] %vm76_vm0, %v1022_v52 }
 0x1f4   :  { %v1551_v53 = vpop.f32.mrb[12].mxu0  ;;  %v1558_v54 = vpop.f32.mrb[12].mxu1 }
 0x1f5   :  { %1340 = vst.msk [vmem:[#allocation8 + $0x48] sm:$0xff] %vm76_vm0, %v1551_v53  ;;  %1342 = vst.msk [vmem:[#allocation8 + $0x58] sm:$0xff] %vm76_vm0, %v1558_v54  ;;  %v1097_v55 = vpop.f32.mrb[13].mxu0  ;;  %v1172_v56 = vpop.f32.mrb[13].mxu1 }
 0x1f6   :  { %1339 = vst.msk [vmem:[#allocation8 + $0x40] sm:$0xff] %vm76_vm0, %v1097_v55  ;;  %1341 = vst.msk [vmem:[#allocation8 + $0x50] sm:$0xff] %vm76_vm0, %v1172_v56 }
 0x1f8   :  { %v1565_v57 = vpop.f32.mrb[14].mxu0  ;;  %v1572_v58 = vpop.f32.mrb[14].mxu1 }
 0x1f9   :  { %1344 = vst.msk [vmem:[#allocation8 + $0x68] sm:$0xff] %vm76_vm0, %v1565_v57  ;;  %1346 = vst.msk [vmem:[#allocation8 + $0x78] sm:$0xff] %vm76_vm0, %v1572_v58  ;;  %v1247_v59 = vpop.f32.mrb[15].mxu0  ;;  %v1322_v60 = vpop.f32.mrb[15].mxu1 }
 0x1fa   :  { %1343 = vst.msk [vmem:[#allocation8 + $0x60] sm:$0xff] %vm76_vm0, %v1247_v59  ;;  %1345 = vst.msk [vmem:[#allocation8 + $0x70] sm:$0xff] %vm76_vm0, %v1322_v60 }
 0x1fb   :  { %1720 = shalt.err (!%p1717_p0)
}
 0x1fc   :  { %s1721_s27 = scalar_lea.hbm %s1881_s3, 2048 }
 0x1fd   :  { %p1722_p1 = scmp.ne.s32.totalorder %s1881_s3, %s1721_s27  ;;  %p1725_p2 = scmp.lt.u32.totalorder %s1721_s27, %s1881_s3 }
 0x1ff   :  { %p1727_p3 = pnand %p1725_p2, %p1722_p1 }
 0x201   :  { %1730 = shalt.err (!%p1727_p3)
}
 0x202   :  { %1358 = dma.vmem_to_hbm [thread:$0]  %s1353_s21, 2048, %s1881_s3, [#allocation4], %s1739_s24, %s1739_s24, %s1740_s25  }
 0x203   :  { %1735 = dma.done.wait [#allocation4], 2048  }
 0x204   :  { %1736 = vsyncadd [#allocation4], 4294965248 }
 0x205   :  { %1362 = vsyncpa [#allocation3], 1 }
 0x206   :  { %1363 = vsyncpa [#allocation6], 1 }
 0x207   :  { %1364 = vsyncpa [#allocation4], 1 }

</bundles_post_ra>
